<compile_context>
chip_gen: v7x
topology: tpu7x:2x2x1
jax: 0.10.0
libtpu: 0.0.40
codegen_flags: <defaults>
</compile_context>

<pallas_src>
import jax
import jax.numpy as jnp
from jax.experimental import pallas as pl
from jax.experimental.pallas import tpu as pltpu


def _tpu_params():
    """Generation-aware MXU width + VMEM limit (with safe fallbacks)."""
    kind = ""
    try:
        kind = jax.devices()[0].device_kind.lower()
    except Exception:
        pass
    wide_mxu = ("v6" in kind) or ("v7" in kind)          # 256-wide MXU on v6e / v7x
    try:
        vmem_cap = int(pltpu.get_tpu_info().vmem_capacity_bytes)
    except Exception:
        vmem_cap = (64 if ("v7" in kind or kind == "") else 128) * 1024 * 1024
    vmem_limit = (3 * vmem_cap) // 4                      # leave headroom for internal scratch
    return wide_mxu, int(vmem_limit)


def _make_kernel(tile_h, R, C2, W_out, h_axis, aligned):
    RRC2 = R * R * C2

    def kernel(x_ref, w_ref, b_ref, o_ref):
        # x_ref: (Hq_p, Wq, C2) bf16  -- whole (space-to-depth) image, resident across h/co
        # w_ref: (RRC2, tile_co) bf16   b_ref: (1, tile_co) f32
        # o_ref: (tile_h, W_out, tile_co) bf16
        h = pl.program_id(h_axis)
        row0 = h * tile_h
        if aligned:
            row0 = pl.multiple_of(row0, 8)
        # Rows for this output tile plus the (R-1)-row tap halo.
        win = x_ref[pl.ds(row0, tile_h + R - 1), :, :]            # (tile_h+R-1, Wq, C2)

        # Pack the R*R taps along the channel axis -> one deep MXU contraction.
        taps = []
        for dh in range(R):
            for dw in range(R):
                taps.append(win[dh:dh + tile_h, dw:dw + W_out, :])  # (tile_h, W_out, C2)
        xt = jnp.concatenate(taps, axis=-1)                        # (tile_h, W_out, RRC2)
        xt = xt.reshape(tile_h * W_out, RRC2)                      # collapse leading dims

        acc = jnp.dot(xt, w_ref[...], preferred_element_type=jnp.float32)
        y = acc + b_ref[...]                                       # folded-BN bias
        y = y * jax.nn.sigmoid(y)                                  # SiLU
        o_ref[...] = y.reshape(tile_h, W_out, -1).astype(o_ref.dtype)

    return kernel


def conv_kxbn_silu(x_nchw, weight, gamma, beta, run_mean, run_var, *, stride, eps=1e-5):
    """ConvKXBNRELU forward (eval-mode BN, SiLU). weight layout: (Cout, Cin, K, K)."""
    N, Cin, H, W = x_nchw.shape
    Cout, Cin_w, K, K2 = weight.shape
    assert Cin_w == Cin and K2 == K
    s = int(stride)
    pad = (K - 1) // 2                          # nn.Conv2d(..., padding=(K-1)//2)
    H_out = (H + 2 * pad - K) // s + 1
    W_out = (W + 2 * pad - K) // s + 1
    R = (K - 1) // s + 1                        # taps per axis in stride-reduced space
    C2 = s * s * Cin                            # channels per reduced-space pixel
    RRC2 = R * R * C2

    # ---- fold eval-mode BatchNorm into conv weight + bias ----
    # TODO(synk): training-mode BatchNorm (batch stats + running-stat updates) not implemented.
    scale = gamma.astype(jnp.float32) / jnp.sqrt(run_var.astype(jnp.float32) + eps)
    bias = beta.astype(jnp.float32) - run_mean.astype(jnp.float32) * scale

    # ---- generation-aware tiling parameters ----
    LANE = 128
    Cout_p = ((Cout + LANE - 1) // LANE) * LANE
    wide_mxu, vmem_limit = _tpu_params()
    tile_co = 256 if (wide_mxu and Cout_p % 256 == 0) else 128

    # ---- output-row tiling: keep out tile (bf16 x2 buffers) + f32 epilogue + packed operand bounded ----
    per_row = W_out * (tile_co * (2 * 2 + 4) + RRC2 * 2)       # bytes per output row in VMEM
    tile_h = int(max(1, min(H_out, (6 * 1024 * 1024) // max(per_row, 1))))
    if tile_h < H_out:
        tile_h = max(8, (tile_h // 8) * 8)                      # 8-aligned dynamic row slices
    h_tiles = -(-H_out // tile_h)
    H_out_p = h_tiles * tile_h

    # ---- weight: (Cout,Cin,K,K) -> (R*R*C2, Cout_p), BN scale folded, bf16 ----
    # Taps with dh*s+a >= K (only when s>1) get exact zero weights.
    w4 = jnp.transpose(weight.astype(jnp.float32), (2, 3, 1, 0)) * scale[None, None, None, :]
    wz = jnp.zeros((R * s, R * s, Cin, Cout), jnp.float32).at[:K, :K].set(w4)
    wz = wz.reshape(R, s, R, s, Cin, Cout).transpose(0, 2, 1, 3, 4, 5)   # (dh,dw,a,b,c,co)
    w2 = jnp.pad(wz.reshape(RRC2, Cout), ((0, 0), (0, Cout_p - Cout))).astype(jnp.bfloat16)
    b2 = jnp.pad(bias, (0, Cout_p - Cout)).reshape(1, Cout_p)            # f32

    # ---- input: NCHW -> NHWC bf16 -> spatial pad -> space-to-depth by the stride (1x relayout) ----
    Hq = -(-(H + 2 * pad) // s)
    Wq = -(-(W + 2 * pad) // s)
    Hq_p = max(Hq, H_out_p + R - 1)             # rows incl. tap halo for padded row tiles
    # Robustness: every static tap slice below must stay inside the block.
    assert Wq >= W_out + R - 1, (Wq, W_out, R)
    assert Hq_p >= H_out_p + R - 1, (Hq_p, H_out_p, R)
    x = jnp.transpose(x_nchw, (0, 2, 3, 1)).astype(jnp.bfloat16)
    x = jnp.pad(x, ((0, 0), (pad, Hq_p * s - H - pad), (pad, Wq * s - W - pad), (0, 0)))
    x = x.reshape(N, Hq_p, s, Wq, s, Cin).transpose(0, 1, 3, 2, 4, 5).reshape(N, Hq_p, Wq, C2)

    # ---- grid order: keep the larger of {weight tile, per-image activation block} resident ----
    co_tiles = Cout_p // tile_co
    weight_resident = (RRC2 * tile_co * 2) > (Hq_p * Wq * C2 * 2)
    if weight_resident:
        grid = (co_tiles, N, h_tiles)
        h_axis = 2
        x_map = lambda co, n, h: (n, 0, 0, 0)
        w_map = lambda co, n, h: (0, co)
        b_map = lambda co, n, h: (0, co)
        o_map = lambda co, n, h: (n, h, 0, co)
    else:
        grid = (N, h_tiles, co_tiles)
        h_axis = 1
        x_map = lambda n, h, co: (n, 0, 0, 0)
        w_map = lambda n, h, co: (0, co)
        b_map = lambda n, h, co: (0, co)
        o_map = lambda n, h, co: (n, h, 0, co)

    kernel = _make_kernel(tile_h, R, C2, W_out, h_axis, aligned=(tile_h % 8 == 0))

    out = pl.pallas_call(
        kernel,
        out_shape=jax.ShapeDtypeStruct((N, H_out_p, W_out, Cout_p), jnp.bfloat16),
        grid_spec=pltpu.PrefetchScalarGridSpec(
            num_scalar_prefetch=0,
            grid=grid,
            in_specs=[
                pl.BlockSpec((None, Hq_p, Wq, C2), x_map),   # whole image, resident
                pl.BlockSpec((RRC2, tile_co), w_map),
                pl.BlockSpec((1, tile_co), b_map),
            ],
            out_specs=pl.BlockSpec((None, tile_h, W_out, tile_co), o_map),
        ),
        compiler_params=pltpu.CompilerParams(
            dimension_semantics=("parallel", "parallel", "parallel"),
            vmem_limit_bytes=vmem_limit,
        ),
    )(x, w2, b2)

    # Single crop + layout pass back to NCHW (module semantics). Keeping NHWC/bf16 across
    # layers would remove this.
    out = out[:, :H_out, :, :Cout]
    return jnp.transpose(out, (0, 3, 1, 2)).astype(x_nchw.dtype)


# ---------------------------- references ----------------------------

def _reference_f32(x, weight, gamma, beta, run_mean, run_var, *, stride, eps=1e-5):
    K = weight.shape[2]
    pad = (K - 1) // 2
    y = jax.lax.conv_general_dilated(
        x.astype(jnp.float32), weight.astype(jnp.float32),
        window_strides=(stride, stride), padding=((pad, pad), (pad, pad)),
        dimension_numbers=('NCHW', 'OIHW', 'NCHW'),
        preferred_element_type=jnp.float32)
    sc = (gamma / jnp.sqrt(run_var + eps))[None, :, None, None]
    bi = (beta - run_mean * gamma / jnp.sqrt(run_var + eps))[None, :, None, None]
    y = y * sc + bi
    return y * jax.nn.sigmoid(y)


def _reference_matched(x, weight, gamma, beta, run_mean, run_var, *, stride, eps=1e-5):
    # Same arithmetic as the kernel: BN scale folded into bf16 weights, bf16 activations,
    # f32 accumulation, f32 bias + SiLU, bf16 output storage.
    K = weight.shape[2]
    pad = (K - 1) // 2
    sc = gamma / jnp.sqrt(run_var + eps)
    bi = beta - run_mean * sc
    w = (weight.astype(jnp.float32) * sc[:, None, None, None]
         ).astype(jnp.bfloat16).astype(jnp.float32)
    xq = x.astype(jnp.bfloat16).astype(jnp.float32)
    y = jax.lax.conv_general_dilated(
        xq, w, window_strides=(stride, stride), padding=((pad, pad), (pad, pad)),
        dimension_numbers=('NCHW', 'OIHW', 'NCHW'),
        preferred_element_type=jnp.float32)
    y = y + bi[None, :, None, None]
    y = y * jax.nn.sigmoid(y)
    return y.astype(jnp.bfloat16).astype(jnp.float32)      # kernel stores bf16


if __name__ == "__main__":
    # ConvKXBNRELU(in_c=4, out_c=16, kernel_size=3, stride=2, act='silu')
    in_c, out_c, ksize, stride = 4, 16, 3, 2
    key = jax.random.PRNGKey(0)
    kx, kw, kg, kb, km, kv = jax.random.split(key, 6)

    x = jax.random.normal(kx, (2, in_c, 16, 16), dtype=jnp.float32)        # NCHW
    weight = 0.1 * jax.random.normal(kw, (out_c, in_c, ksize, ksize), dtype=jnp.float32)
    gamma = 1.0 + 0.1 * jax.random.normal(kg, (out_c,), dtype=jnp.float32)
    beta = 0.1 * jax.random.normal(kb, (out_c,), dtype=jnp.float32)
    run_mean = 0.05 * jax.random.normal(km, (out_c,), dtype=jnp.float32)
    run_var = 1.0 + 0.1 * jnp.abs(jax.random.normal(kv, (out_c,), dtype=jnp.float32))

    fwd = jax.jit(lambda a, b, c, d, e, f: conv_kxbn_silu(a, b, c, d, e, f, stride=stride))
    out = jax.block_until_ready(fwd(x, weight, gamma, beta, run_mean, run_var))

    ref_m = _reference_matched(x, weight, gamma, beta, run_mean, run_var, stride=stride)
    ref_f = _reference_f32(x, weight, gamma, beta, run_mean, run_var, stride=stride)

    assert out.shape == (2, out_c, 8, 8), out.shape
    err_m = float(jnp.max(jnp.abs(out - ref_m)))
    err_f = float(jnp.max(jnp.abs(out - ref_f)))
    assert jnp.allclose(out, ref_m, atol=2e-2, rtol=2e-2), err_m   # matched-precision parity
    assert jnp.allclose(out, ref_f, atol=6e-2, rtol=6e-2), err_f   # loose parity vs pure-f32 module

    print("KERNEL_OK")
</pallas_src>

<mosaic_0001>
module attributes {stable_mosaic.version = 11 : i64} {
  func.func @kernel(%arg0: i32, %arg1: i32, %arg2: i32, %arg3: memref<1x9x9x16xbf16, #tpu.memory_space<vmem>>, %arg4: memref<64x128xbf16, #tpu.memory_space<vmem>>, %arg5: memref<1x128xf32, #tpu.memory_space<vmem>>, %arg6: memref<1x8x8x128xbf16, #tpu.memory_space<vmem>>) attributes {dimension_semantics = [#tpu.dimension_semantics<parallel>, #tpu.dimension_semantics<parallel>, #tpu.dimension_semantics<parallel>], iteration_bounds = array<i64: 1, 2, 1>, scalar_prefetch = 0 : i64, scratch_operands = 0 : i64, tpu.core_type = #tpu.core_type<tc>, window_params = [{transform_indices = @transform_0, window_bounds = array<i64: 1, 9, 9, 16>}, {transform_indices = @transform_1, window_bounds = array<i64: 64, 128>}, {transform_indices = @transform_2, window_bounds = array<i64: 1, 128>}, {transform_indices = @transform_3, window_bounds = array<i64: 1, 8, 8, 128>}]} {
    %c8_i32 = arith.constant 8 : i32
    %0 = arith.muli %arg2, %c8_i32 : i32
    %1 = tpu.assume_multiple %0, 8 : i32
    %c0 = arith.constant 0 : index
    %2 = arith.index_cast %1 : i32 to index
    %c0_0 = arith.constant 0 : index
    %c0_1 = arith.constant 0 : index
    %3 = vector.load %arg3[%c0, %2, %c0_0, %c0_1] : memref<1x9x9x16xbf16, #tpu.memory_space<vmem>>, vector<1x9x9x16xbf16>
    %4 = vector.shape_cast %3 : vector<1x9x9x16xbf16> to vector<9x9x16xbf16>
    %5 = vector.extract_strided_slice %4 {offsets = [0, 0, 0], sizes = [8, 8, 16], strides = [1, 1, 1]} : vector<9x9x16xbf16> to vector<8x8x16xbf16>
    %6 = vector.extract_strided_slice %4 {offsets = [0, 1, 0], sizes = [8, 8, 16], strides = [1, 1, 1]} : vector<9x9x16xbf16> to vector<8x8x16xbf16>
    %7 = vector.extract_strided_slice %4 {offsets = [1, 0, 0], sizes = [8, 8, 16], strides = [1, 1, 1]} : vector<9x9x16xbf16> to vector<8x8x16xbf16>
    %8 = vector.extract_strided_slice %4 {offsets = [1, 1, 0], sizes = [8, 8, 16], strides = [1, 1, 1]} : vector<9x9x16xbf16> to vector<8x8x16xbf16>
    %9 = tpu.concatenate %5, %6, %7, %8 in 2 : vector<8x8x16xbf16>, vector<8x8x16xbf16>, vector<8x8x16xbf16>, vector<8x8x16xbf16> -> vector<8x8x64xbf16>
    %10 = vector.shape_cast %9 : vector<8x8x64xbf16> to vector<64x64xbf16>
    %c0_2 = arith.constant 0 : index
    %c0_3 = arith.constant 0 : index
    %11 = vector.load %arg4[%c0_2, %c0_3] : memref<64x128xbf16, #tpu.memory_space<vmem>>, vector<64x128xbf16>
    %cst = arith.constant dense<0.000000e+00> : vector<64x128xf32>
    %12 = tpu.matmul %10, %11, %cst {dimension_numbers = #tpu.dot_dimension_numbers<[1], [0], [0], [1], [0, 0, 1, 1], [], []>} : vector<64x64xbf16>, vector<64x128xbf16>, vector<64x128xf32> -> vector<64x128xf32>
    %c0_4 = arith.constant 0 : index
    %c0_5 = arith.constant 0 : index
    %13 = vector.load %arg5[%c0_4, %c0_5] : memref<1x128xf32, #tpu.memory_space<vmem>>, vector<1x128xf32>
    %14 = vector.broadcast %13 : vector<1x128xf32> to vector<64x128xf32>
    %15 = arith.addf %12, %14 : vector<64x128xf32>
    %16 = arith.negf %15 : vector<64x128xf32>
    %17 = math.exp %16 : vector<64x128xf32>
    %cst_6 = arith.constant 1.000000e+00 : f32
    %18 = vector.broadcast %cst_6 : f32 to vector<64x128xf32>
    %19 = arith.addf %18, %17 : vector<64x128xf32>
    %20 = arith.divf %18, %19 : vector<64x128xf32>
    %21 = arith.mulf %15, %20 : vector<64x128xf32>
    %22 = vector.shape_cast %21 : vector<64x128xf32> to vector<8x8x128xf32>
    %23 = arith.truncf %22 : vector<8x8x128xf32> to vector<8x8x128xbf16>
    %c0_7 = arith.constant 0 : index
    %c0_8 = arith.constant 0 : index
    %c0_9 = arith.constant 0 : index
    %c0_10 = arith.constant 0 : index
    %24 = vector.load %arg6[%c0_7, %c0_8, %c0_9, %c0_10] : memref<1x8x8x128xbf16, #tpu.memory_space<vmem>>, vector<1x8x8x128xbf16>
    %25 = vector.shape_cast %24 : vector<1x8x8x128xbf16> to vector<8x8x128xbf16>
    %26 = vector.shape_cast %23 : vector<8x8x128xbf16> to vector<1x8x8x128xbf16>
    tpu.vector_store %arg6[%c0_7, %c0_8, %c0_9, %c0_10], %26 {strides = array<i32>} : memref<1x8x8x128xbf16, #tpu.memory_space<vmem>>, vector<1x8x8x128xbf16>,
    return
  }
  func.func @transform_0(%arg0: i32, %arg1: i32, %arg2: i32) -> (i32, i32, i32, i32) {
    %c0_i32 = arith.constant 0 : i32
    %c0_i32_0 = arith.constant 0 : i32
    %c0_i32_1 = arith.constant 0 : i32
    %c0_i32_2 = arith.constant 0 : i32
    return %arg1, %c0_i32, %c0_i32_0, %c0_i32_1 : i32, i32, i32, i32
  }
  func.func @transform_1(%arg0: i32, %arg1: i32, %arg2: i32) -> (i32, i32) {
    %c0_i32 = arith.constant 0 : i32
    %c0_i32_0 = arith.constant 0 : i32
    return %c0_i32, %arg0 : i32, i32
  }
  func.func @transform_2(%arg0: i32, %arg1: i32, %arg2: i32) -> (i32, i32) {
    %c0_i32 = arith.constant 0 : i32
    %c0_i32_0 = arith.constant 0 : i32
    return %c0_i32, %arg0 : i32, i32
  }
  func.func @transform_3(%arg0: i32, %arg1: i32, %arg2: i32) -> (i32, i32, i32, i32) {
    %c0_i32 = arith.constant 0 : i32
    %c0_i32_0 = arith.constant 0 : i32
    return %arg1, %arg2, %c0_i32, %arg0 : i32, i32, i32, i32
  }
}

</mosaic_0001>

<bundles_post_ra>
// kernel: _lambda_.1
= control target key start
LH: loop header
LB: loop body
LE: loop exit
PB: predicated region body
PF: predicated region fallthrough
CT: control target
= control target key end

     0   :  { %8 = vsyncpa [#allocation3], 0  ;;  %s1667_s0 = inlined_call_operand.hbm [shape: bf16[2,9,9,16], index: 0, kind: input, shape index: {}]   ;;  %s1668_s1 = inlined_call_operand.hbm [shape: bf16[64,128], index: 1, kind: input, shape index: {}]   ;;  %s1669_s2 = inlined_call_operand.hbm [shape: f32[1,128], index: 2, kind: input, shape index: {}]   ;;  %s1670_s3 = inlined_call_operand.hbm [shape: bf16[2,8,8,128], index: 3, kind: output, shape index: {}]  }
   0x1   :  { %10 = vsyncpa [#allocation3 + $0x1], 0 }
   0x2   :  { %11 = vsyncpa [#allocation6], 0 }
   0x3   :  { %12 = vsyncpa [#allocation4], 0 }
   0x4   :  { %14 = vsyncpa [#allocation4 + $0x1], 0  ;;  %s1300_s12 = smov 0   ;;  %s1302_s13 = smov 0  }
   0x5   :  { %s1304_s14 = smov 0   ;;  %s1306_s15 = smov 0  }
   0x6   :  { %s1308_s16 = smov 0   ;;  %s1310_s17 = smov 0  }
   0x7 LB: > { %s839_s18 = sadd.s32 4294967295, %s1267_s17   ;;  %s840_s19 = sadd.s32 4294967294, %s1267_s17   ;;  %s1267_s17 = sphi %s1310_s17, %s20_s17   ;;  %s1263_s16 = sphi %s1308_s16, %s1692_s16   ;;  %s1259_s15 = sphi %s1306_s15, %s1691_s15   ;;  %s1255_s14 = sphi %s1304_s14, %s1690_s14   ;;  %s1251_s13 = sphi %s1302_s13, %s1689_s13   ;;  %s1247_s12 = sphi %s1300_s12, %s1688_s12  }
   0x8   : > { %p59_p0 = scmp.ne.s32.totalorder %s1251_s13, %s1247_s12  ;;  %p1334_p1 = scmp.eq.s32.totalorder %s839_s18, 0 }
   0x9   : > { %p1338_p2 = scmp.eq.s32.totalorder %s839_s18, 1  ;;  %p145_p3 = scmp.eq.s32.totalorder %s840_s19, 1 }
   0xa   : > { %s1675_s20 = scalar_select %p1334_p1, 1, 0 }
   0xb   : > { %p1344_p4 = por %p1334_p1, %p59_p0  ;;  %p841_p5 = scmp.ge.s32.totalorder %s1267_s17, 1 }
   0xc   : > { %p1349_p6 = por %p145_p3, %p59_p0  ;;  %p152_p7 = scmp.lt.s32.totalorder %s1267_s17, 3 }
   0xd   : > { %s1677_s22 = scalar_select %p1344_p4, 1, 0 }
   0xe   : > { %s1678_s23 = scalar_select %p1349_p6, 1, 0 }
   0xf   : > { %p1354_p8 = pnand %p841_p5, %p152_p7  ;;  %s1269_s25 = smov [#allocation5]  }
  0x10   : > { %s166_s26 = sshll.u32 %s1269_s25, 4  ;;  %s1270_s28 = smov [#allocation7]   ;;  %s1358_s26 = int_to_ptr.vmem [resolvable:$true] %s166_s26 }
  0x11   : > { %p964_p9 = pneg %p1354_p8  ;;  %s182_s29 = sshll.u32 %s1270_s28, 4  ;;  %s1369_s29 = int_to_ptr.vmem [resolvable:$true] %s182_s29 }
  0x12   : > { %s1095_s5 = scalar_lea.hbm %s1668_s1, 512 }
  0x13   : > { %p1365_p11 = pnand %p964_p9, %p1334_p1  ;;  %p1096_p12 = scmp.ne.s32.totalorder %s1668_s1, %s1095_s5 }
  0x14   : > { %p1102_p5 = scmp.lt.u32.totalorder %s1095_s5, %s1668_s1 }
  0x15   : > { %p1097_p13 = pneg %p1365_p11 }
  0x17   : > { %p1098_p0 = pnand %p1097_p13, %p1096_p12 }
  0x19   : > { %p1099_p3 = pneg %p1098_p0 }
  0x1b   : > { %p1104_p7 = pnand %p1102_p5, %p1099_p3 }
  0x1d   : > { %1107 = shalt.err (!%p1104_p7)
}
  0x1e   : > { %s1108_s10 = scalar_lea.vmem %s1358_s26, 512  ;;  %p1116_p1 = scmp.lt.s32.totalorder %s1358_s26, %s1358_s26 }
  0x1f   : > { %p1109_p9 = scmp.ne.s32.totalorder %s1358_s26, %s1108_s10  ;;  %p1117_p12 = scmp.lt.s32.totalorder %s1108_s10, %s1108_s10 }
  0x21   : > { %p1111_p10 = pnand %p1109_p9, %p1097_p13  ;;  %p1118_p0 = por %p1117_p12, %p1116_p1 }
  0x23   : > { %p1112_p6 = pneg %p1111_p10 }
  0x25   : > { %p1119_p4 = pnand %p1118_p0, %p1112_p6 }
  0x27   : > { %1122 = shalt.err (!%p1119_p4)
}
  0x28   : > { %s1271_s11 = smov 64   ;;  %s1272_s18 = smov 4  }
  0x29   : > { %967 = dma.hbm_to_vmem [thread:$0]  (!%p1365_p11), %s1668_s1, 512, %s1358_s26, [#allocation6], %s1271_s11, %s1271_s11, %s1272_s18  }
  0x2a   : > { %s1123_s4 = scalar_lea.hbm %s1669_s2, 16 }
  0x2b   : > { %p1124_p1 = scmp.ne.s32.totalorder %s1669_s2, %s1123_s4  ;;  %p1130_p10 = scmp.lt.u32.totalorder %s1123_s4, %s1669_s2 }
  0x2d   : > { %p1126_p4 = pnand %p1124_p1, %p1097_p13 }
  0x2f   : > { %p1127_p6 = pneg %p1126_p4 }
  0x31   : > { %p1132_p3 = pnand %p1130_p10, %p1127_p6 }
  0x33   : > { %1135 = shalt.err (!%p1132_p3)
}
  0x34   : > { %s1136_s26 = scalar_lea.vmem %s1369_s29, 16  ;;  %s1143_s9 = scalar_lea.vmem %s1369_s29, 32 }
  0x35   : > { %p1137_p5 = scmp.ne.s32.totalorder %s1369_s29, %s1136_s26  ;;  %p1144_p12 = scmp.lt.s32.totalorder %s1369_s29, %s1369_s29 }
  0x36   : > { %p1145_p0 = scmp.lt.s32.totalorder %s1143_s9, %s1136_s26 }
  0x37   : > { %p1139_p7 = pnand %p1137_p5, %p1097_p13 }
  0x38   : > { %p1146_p1 = por %p1145_p0, %p1144_p12 }
  0x39   : > { %p1140_p9 = pneg %p1139_p7 }
  0x3b   : > { %p1147_p4 = pnand %p1146_p1, %p1140_p9 }
  0x3d   : > { %1150 = shalt.err (!%p1147_p4)
}
  0x3e   : > { %970 = dma.hbm_to_vmem [thread:$0]  (!%p1365_p11), %s1669_s2, 16, %s1369_s29, [#allocation6]  }
  0x3f   : > { %s35_s25 = sadd.s32 1, %s1263_s16  ;;  %s46_s28 = sadd.s32 1, %s1255_s14 }
  0x40   : > { %p37_p13 = scmp.ge.s32.totalorder %s35_s25, 2  ;;  %p53_p6 = scmp.ne.s32.totalorder %s1255_s14, %s1251_s13 }
  0x41   : > { %p54_p10 = scmp.eq.s32.totalorder %s1267_s17, 0  ;;  %p981_p3 = scmp.lt.s32.totalorder %s1267_s17, 2 }
  0x42   : > { %s1694_s25 = smov (%p37_p13, %s35_s25), 0  ;;  %p1437_p7 = por %p1338_p2, %p53_p6 }
  0x43   : > { %p55_p5 = por %p54_p10, %p53_p6  ;;  %s43_s30 = ssub.s32 %s1263_s16, %s1694_s25 }
  0x44   : > { %s1681_s27 = scalar_select %p1437_p7, 1, 0 }
  0x45   : > { %s193_s4 = sand.u32 1, %s1255_s14   ;;  %p44_p9 = scmp.eq.s32.totalorder %s43_s30, 0 }
  0x46   : > { %s949_s29 = smul.u32 72, %s193_s4  ;;  %p1444_p11 = pnand %p981_p3, %p55_p5 }
  0x47   : > { %s1449_s6 = scalar_select %p44_p9, %s1255_s14, %s46_s28  }
  0x48   : > { %s950_s7 = smul.u32 1152, %s1263_s16  ;;  %s197_s8 = scalar_lea.vmem [#allocation2], %s949_s29 }
  0x49   : > { %s204_s26 = sshll.u32 %s197_s8, 4  ;;  %s1459_s19 = scalar_lea.sflag [#allocation3], %s193_s4  ;;  %s1457_s26 = int_to_ptr.vmem [resolvable:$true] %s204_s26 }
  0x4a   : > { %s1455_s10 = scalar_lea.hbm %s1667_s0, %s950_s7  ;;  %p1153_p12 = pneg %p1444_p11 }
  0x4b   : > { %s1151_s30 = scalar_lea.hbm %s1455_s10, 1152  ;;  %s1156_s7 = scalar_lea.hbm %s1667_s0, 2304 }
  0x4c   : > { %p1152_p2 = scmp.ne.s32.totalorder %s1455_s10, %s1151_s30  ;;  %p1157_p4 = scmp.lt.u32.totalorder %s1455_s10, %s1667_s0 }
  0x4d   : > { %p1158_p13 = scmp.lt.u32.totalorder %s1156_s7, %s1151_s30  ;;  %p1160_p10 = scmp.lt.u32.totalorder %s1151_s30, %s1455_s10 }
  0x4e   : > { %p1154_p0 = pnand %p1153_p12, %p1152_p2 }
  0x4f   : > { %p1159_p6 = por %p1158_p13, %p1157_p4 }
  0x50   : > { %p1155_p1 = pneg %p1154_p0 }
  0x51   : > { %p1161_p3 = por %p1160_p10, %p1159_p6 }
  0x53   : > { %p1162_p5 = pnand %p1161_p3, %p1155_p1 }
  0x55   : > { %1165 = shalt.err (!%p1162_p5)
}
  0x56   : > { %s1166_s4 = scalar_lea.vmem %s1457_s26, 1152  ;;  %s1273_s9 = smov [#allocation2]  }
  0x57   : > { %p1167_p9 = scmp.ne.s32.totalorder %s1457_s26, %s1166_s4  ;;  %s1171_s28 = sshll.u32 %s1273_s9, 4  ;;  %s1172_s28 = int_to_ptr.vmem [resolvable:$false] %s1171_s28 }
  0x58   : > { %s1173_s29 = scalar_lea.vmem %s1172_s28, 2304  ;;  %p1174_p7 = scmp.lt.s32.totalorder %s1457_s26, %s1172_s28 }
  0x59   : > { %p1169_p2 = pnand %p1167_p9, %p1153_p12  ;;  %p1175_p4 = scmp.lt.s32.totalorder %s1173_s29, %s1166_s4 }
  0x5b   : > { %p1170_p0 = pneg %p1169_p2  ;;  %p1176_p13 = por %p1175_p4, %p1174_p7 }
  0x5d   : > { %p1177_p6 = pnand %p1176_p13, %p1170_p0 }
  0x5f   : > { %1180 = shalt.err (!%p1177_p6)
}
  0x60   : > { %974 = dma.hbm_to_vmem [thread:$0]  (!%p1444_p11), %s1455_s10, 1152, %s1457_s26, %s1459_s19, %s1271_s11, %s1271_s11, %s1272_s18  }
  0x61   : > { %216 = sbr.rel (%p1354_p8) target bundleno = 540 (0x21c), region = 32  ;;  %s1493_s30 = sand.u32 (!%p1354_p8), 1, %s1251_s13  }
  0x62   : > { %s951_s7 = smul.u32 (!%p1354_p8), 72, %s1493_s30  ;;  %s219_s8 = scalar_lea.sflag (!%p1354_p8), [#allocation3], %s1493_s30 }
  0x63   : > { %p1683_p7 = scmp.ne.s32.totalorder (!%p1354_p8), %s1677_s22, 0 }
  0x64   : > { %s1497_s21 = scalar_lea.vmem (!%p1354_p8), [#allocation2], %s951_s7 }
  0x68   : > { %1234 = dma.done.wait (%p1683_p7), %s219_s8, 1152  }
  0x69   : > { %1236 = vsyncadd (%p1683_p7), %s219_s8, 4294966144  ;;  %p1684_p11 = scmp.ne.s32.totalorder %s1675_s20, 0 }
  0x6b   : > { %1238 = dma.done.wait (%p1684_p11), [#allocation6], 528  }
  0x6c   : > { %1240 = vsyncadd (%p1684_p11), [#allocation6], 4294966768  ;;  %v1508_v0 = vld [vmem:[%s1497_s21 + $0x10] sm:$0xf]  ;;  %v264_v1 = vld [vmem:[%s1497_s21 + $0x14] sm:$0x1] }
  0x6d   : > { %v1512_v2 = vld [vmem:[%s1497_s21 + $0x8] sm:$0xf]  ;;  %v859_v3 = vcombine.low %v1508_v0, %v1508_v0  ;;  %v262_v4 = vld [vmem:[%s1497_s21 + $0xc] sm:$0x1]  ;;  %v1520_v6 = vld [vmem:[%s1497_s21 + $0x20] sm:$0xf]  ;;  %v852_v8 = vcombine.low %v1508_v0, %v264_v1 }
  0x6e   : > { %v858_v5 = vcombine.low %v1512_v2, %v1512_v2  ;;  %v268_v7 = vld [vmem:[%s1497_s21 + $0x24] sm:$0x1]  ;;  %v851_v9 = vcombine.low %v1512_v2, %v262_v4  ;;  %v1527_v11 = vld [vmem:[%s1497_s21] sm:$0xf]  ;;  %v1531_v13 = vld [vmem:[%s1497_s21 + $0x28] sm:$0xf]  ;;  %v861_v62 = vcombine.low %v1520_v6, %v1520_v6 }
  0x6f   : > { %v854_v10 = vcombine.low %v1520_v6, %v268_v7  ;;  %v260_v12 = vld [vmem:[%s1497_s21 + $0x4] sm:$0x1]  ;;  %s1274_s20 = smov 32   ;;  %v270_v15 = vld [vmem:[%s1497_s21 + $0x2c] sm:$0x1]  ;;  %v334_v29 = vshll.u32 %v852_v8, 16  ;;  %v862_v61 = vcombine.low %v1531_v13, %v1531_v13 }
  0x70   : > { %401 = vrot.lane.b32.xlu1 %v859_v3, %s1274_s20  ;;  %399 = vrot.lane.b32.xlu0 %v858_v5, %s1274_s20  ;;  %v850_v14 = vcombine.low %v1527_v11, %v260_v12  ;;  %v1538_v16 = vld [vmem:[%s1497_s21 + $0x18] sm:$0xf]  ;;  %v855_v19 = vcombine.low %v1531_v13, %v270_v15  ;;  %v266_v20 = vld [vmem:[%s1497_s21 + $0x1c] sm:$0x1]  ;;  %v327_v23 = vshll.u32 %v851_v9, 16  ;;  %v325_v32 = vshrl.u32 %v851_v9, 16 }
  0x71   : > { %v346_v17 = vshrl.u32 %v854_v10, 16  ;;  %v348_v18 = vshll.u32 %v854_v10, 16  ;;  %v853_v24 = vcombine.low %v1538_v16, %v266_v20  ;;  %v1544_v25 = vld [vmem:[%s1497_s21 + $0x38] sm:$0xf]  ;;  %v274_v30 = vld [vmem:[%s1497_s21 + $0x3c] sm:$0x1]  ;;  %v860_v1 = vcombine.low %v1538_v16, %v1538_v16 }
  0x72   : > { %v318_v21 = vshrl.u32 %v850_v14, 16  ;;  %v320_v22 = vshll.u32 %v850_v14, 16  ;;  %v353_v27 = vshrl.u32 %v855_v19, 16  ;;  %v355_v28 = vshll.u32 %v855_v19, 16  ;;  %v1548_v35 = vld [vmem:[%s1497_s21 + $0x30] sm:$0xf] }
  0x73   : > { %v350_v26 = vrot.slane %v348_v18, 1  ;;  %v329_v33 = vrot.slane %v327_v23, 1  ;;  %v341_v34 = vshll.u32 %v853_v24, 16  ;;  %v857_v38 = vcombine.low %v1544_v25, %v274_v30  ;;  %v272_v39 = vld [vmem:[%s1497_s21 + $0x34] sm:$0x1]  ;;  %s1275_s22 = smov 16  }
  0x74   : > { %v322_v31 = vrot.slane %v320_v22, 1  ;;  %v357_v37 = vrot.slane %v355_v28, 1  ;;  %v339_v41 = vshrl.u32 %v853_v24, 16  ;;  %v332_v42 = vshrl.u32 %v852_v8, 16  ;;  %v1059_v57 = vld [vmem:[#allocation5] sm:$0xff]   ;;  %v1060_v60 = vld [vmem:[#allocation5 + $0x8] sm:$0xff]  }
  0x75   : > { %v1550_v36 = vor.u32 %v350_v26, %v346_v17  ;;  %v856_v43 = vcombine.low %v1548_v35, %v272_v39  ;;  %v343_v45 = vrot.slane %v341_v34, 1  ;;  %v369_v46 = vshll.u32 %v857_v38, 16  ;;  %925 = vmatprep.subr.bf16.mxu0 %v1059_v57  ;;  %941 = vmatprep.subr.bf16.mxu1 %v1059_v57  ;;  %v1061_v63 = vld [vmem:[#allocation5 + $0x10] sm:$0xff]   ;;  %v1062_v5 = vld [vmem:[#allocation5 + $0x18] sm:$0xff]   ;;  %s1276_s24 = smov 48   ;;  %s849_s11 = sshll.u32 %s1493_s30, 5 }
  0x76   : > { %v323_v40 = vor.u32 %v322_v31, %v318_v21  ;;  %v358_v44 = vor.u32 %v357_v37, %v353_v27  ;;  %v330_v47 = vor.u32 %v329_v33, %v325_v32  ;;  %v336_v48 = vrot.slane %v334_v29, 1  ;;  %926 = vmatpush3.bf16.msra.mxu0 %v1059_v57  ;;  %945 = vmatpush3.bf16.msra.mxu1 %v1059_v57  ;;  %v275_v3 = vld [vmem:[%s1497_s21 + $0x40] sm:$0xf]  ;;  %v276_v7 = vld [vmem:[%s1497_s21 + $0x44] sm:$0x1]  ;;  %s252_s18 = scalar_lea.vmem [#allocation8], %s849_s11 }
  0x77   : > { %381 = vrot.lane.b32.xlu1 %v1550_v36, %s1275_s22  ;;  %v362_v49 = vshll.u32 %v856_v43, 16  ;;  %v344_v50 = vor.u32 %v343_v45, %v339_v41  ;;  %v367_v51 = vshrl.u32 %v857_v38, 16  ;;  %v371_v52 = vrot.slane %v369_v46, 1  ;;  %927 = vmatprep.subr.bf16.mxu0 %v1060_v60  ;;  %s726_s5 = sshll.u32 %s252_s18, 4  ;;  %s893_s26 = sshll.u32 %s1259_s15, 9  ;;  %s1613_s5 = int_to_ptr.vmem [resolvable:$true] %s726_s5 }
  0x78   : > { %373 = vrot.lane.b32.xlu0 %v323_v40, %s1275_s22  ;;  %v337_v53 = vor.u32 %v336_v48, %v332_v42  ;;  %v360_v54 = vshrl.u32 %v856_v43, 16  ;;  %v863_v59 = vcombine.low %v1548_v35, %v1548_v35  ;;  %942 = vmatprep.subr.bf16.mxu1 %v1060_v60  ;;  %v865_v4 = vcombine.low %v275_v3, %v275_v3  ;;  %s1618_s4 = scalar_lea.hbm %s1670_s3, %s893_s26  ;;  %s710_s15 = scalar_lea.sflag [#allocation4], %s1493_s30 }
  0x79   : > { %v364_v55 = vrot.slane %v362_v49, 1  ;;  %v372_v56 = vor.u32 %v371_v52, %v367_v51  ;;  %v864_v8 = vcombine.low %v1544_v25, %v1544_v25  ;;  %v866_v9 = vcombine.low %v275_v3, %v276_v7  ;;  %s1181_s9 = scalar_lea.vmem %s1613_s5, 512  ;;  %p1685_p12 = scmp.ne.s32.totalorder %s1681_s27, 0 }
  0x7a   : > { %928 = vmatpush3.bf16.msra.mxu0 %v1060_v60  ;;  %946 = vmatpush3.bf16.msra.mxu1 %v1060_v60  ;;  %vm441_vm0 = vcmask 130048   ;;  %vm466_vm1 = vcmask 261120   ;;  %vm483_vm2 = vcmask 392192   ;;  %vm559_vm3 = vcmask 523264   ;;  %p1182_p8 = scmp.ne.s32.totalorder %s1613_s5, %s1181_s9  ;;  %s1277_s28 = smov [#allocation8]  }
  0x7b   : > { %383 = vrot.lane.b32.xlu1 %v358_v44, %s1275_s22  ;;  %v365_v58 = vor.u32 %v364_v55, %v360_v54  ;;  %929 = vmatprep.subr.bf16.mxu0 %v1061_v63  ;;  %v421_v10 = vshll.u32 %v866_v9, 16  ;;  %v419_v12 = vshrl.u32 %v866_v9, 16  ;;  %s1185_s29 = sshll.u32 %s1277_s28, 4  ;;  %s1186_s29 = int_to_ptr.vmem [resolvable:$false] %s1185_s29 }
  0x7c   : > { %375 = vrot.lane.b32.xlu0 %v330_v47, %s1275_s22  ;;  %943 = vmatprep.subr.bf16.mxu1 %v1061_v63  ;;  %p1183_p1 = pnand %p1182_p8, %p1685_p12  ;;  %s1187_s7 = scalar_lea.vmem %s1186_s29, 1024 }
  0x7d   : > { %v423_v14 = vrot.slane %v421_v10, 1  ;;  %p1188_p3 = scmp.lt.s32.totalorder %s1613_s5, %s1186_s29  ;;  %p1189_p5 = scmp.lt.s32.totalorder %s1187_s7, %s1181_s9 }
  0x7e   : > { %930 = vmatpush3.bf16.msra.mxu0 %v1061_v63  ;;  %947 = vmatpush3.bf16.msra.mxu1 %v1061_v63  ;;  %p1184_p10 = pneg %p1183_p1 }
  0x7f   : > { %379 = vrot.lane.b32.xlu1 %v344_v50, %s1275_s22  ;;  %931 = vmatprep.subr.bf16.mxu0 %v1062_v5  ;;  %v424_v15 = vor.u32 %v423_v14, %v419_v12  ;;  %p1190_p9 = por %p1189_p5, %p1188_p3 }
  0x80   : > { %377 = vrot.lane.b32.xlu0 %v337_v53, %s1275_s22  ;;  %944 = vmatprep.subr.bf16.mxu1 %v1062_v5 }
  0x81   : > { %p1191_p2 = pnand %p1190_p9, %p1184_p10 }
  0x82   : > { %932 = vmatpush3.bf16.msra.mxu0 %v1062_v5  ;;  %948 = vmatpush3.bf16.msra.mxu1 %v1062_v5 }
  0x83   : > { %387 = vrot.lane.b32.xlu1 %v372_v56, %s1275_s22 }
  0x84   : > { %385 = vrot.lane.b32.xlu0 %v365_v58, %s1275_s22 }
  0x87   : > { %409 = vrot.lane.b32.xlu1 %v863_v59, %s1274_s20 }
  0x88   : > { %407 = vrot.lane.b32.xlu0 %v862_v61, %s1274_s20 }
  0x8b   : > { %405 = vrot.lane.b32.xlu1 %v861_v62, %s1274_s20 }
  0x8c   : > { %403 = vrot.lane.b32.xlu0 %v860_v1, %s1274_s20 }
  0x8f   : > { %413 = vrot.lane.b32.xlu1 %v865_v4, %s1274_s20 }
  0x90   : > { %411 = vrot.lane.b32.xlu0 %v864_v8, %s1274_s20 }
  0x93   : > { %427 = vrot.lane.b32.xlu1 %v337_v53, %s1276_s24 }
  0x94   : > { %425 = vrot.lane.b32.xlu0 %v330_v47, %s1276_s24 }
  0x97   : > { %435 = vrot.lane.b32.xlu1 %v365_v58, %s1276_s24 }
  0x98   : > { %433 = vrot.lane.b32.xlu0 %v358_v44, %s1276_s24 }
  0x9b   : > { %431 = vrot.lane.b32.xlu1 %v1550_v36, %s1276_s24 }
  0x9c   : > { %429 = vrot.lane.b32.xlu0 %v344_v50, %s1276_s24 }
  0x9f   : > { %439 = vrot.lane.b32.xlu1 %v424_v15, %s1276_s24 }
  0xa0   : > { %437 = vrot.lane.b32.xlu0 %v372_v56, %s1276_s24 }
  0xe2   : > { %v402_v17 = vpop.permute.xlu1 %401  ;;  %v400_v18 = vpop.permute.xlu0 %399 }
  0xe9   : > { %v382_v19 = vpop.permute.xlu1 %381 }
  0xea   : > { %v374_v20 = vpop.permute.xlu0 %373 }
  0xeb   : > { %v444_v36 = vsel %vm441_vm0, %v1527_v11, %v374_v20  ;;  %v456_v11 = vsel %vm441_vm0, %v1520_v6, %v382_v19 }
  0xec   : > { %v468_v40 = vsel %vm466_vm1, %v444_v36, %v400_v18 }
  0xed   : > { %v384_v21 = vpop.permute.xlu1 %383 }
  0xee   : > { %v376_v22 = vpop.permute.xlu0 %375 }
  0xef   : > { %v447_v33 = vsel %vm441_vm0, %v1512_v2, %v376_v22  ;;  %v459_v2 = vsel %vm441_vm0, %v1531_v13, %v384_v21 }
  0xf0   : > { %v470_v38 = vsel %vm466_vm1, %v447_v33, %v402_v17 }
  0xf1   : > { %v380_v23 = vpop.permute.xlu1 %379 }
  0xf2   : > { %v378_v24 = vpop.permute.xlu0 %377  ;;  %v453_v50 = vsel %vm441_vm0, %v1538_v16, %v380_v23 }
  0xf3   : > { %v450_v51 = vsel %vm441_vm0, %v1508_v0, %v378_v24 }
  0xf5   : > { %v388_v26 = vpop.permute.xlu1 %387 }
  0xf6   : > { %v386_v27 = vpop.permute.xlu0 %385  ;;  %v465_v57 = vsel %vm441_vm0, %v1544_v25, %v388_v26  ;;  %v867_v25 = vld [vmem:[#allocation7] ss:$0 sm:$0xff] }
  0xf7   : > { %v462_v58 = vsel %vm441_vm0, %v1548_v35, %v386_v27 }
  0xf9   : > { %v410_v28 = vpop.permute.xlu1 %409 }
  0xfa   : > { %v408_v29 = vpop.permute.xlu0 %407  ;;  %v478_v44 = vsel %vm466_vm1, %v459_v2, %v410_v28 }
  0xfb   : > { %v476_v46 = vsel %vm466_vm1, %v456_v11, %v408_v29 }
  0xfd   : > { %v406_v30 = vpop.permute.xlu1 %405 }
  0xfe   : > { %v404_v31 = vpop.permute.xlu0 %403  ;;  %v474_v6 = vsel %vm466_vm1, %v453_v50, %v406_v30 }
  0xff   : > { %v472_v53 = vsel %vm466_vm1, %v450_v51, %v404_v31 }
 0x101   : > { %v414_v32 = vpop.permute.xlu1 %413 }
 0x102   : > { %v412_v34 = vpop.permute.xlu0 %411  ;;  %v482_v0 = vsel %vm466_vm1, %v465_v57, %v414_v32 }
 0x103   : > { %v480_v60 = vsel %vm466_vm1, %v462_v58, %v412_v34 }
 0x105   : > { %v428_v37 = vpop.permute.xlu1 %427 }
 0x106   : > { %v487_v39 = vsel %vm483_vm2, %v470_v38, %v428_v37  ;;  %v426_v41 = vpop.permute.xlu0 %425 }
 0x107   : > { %v485_v42 = vsel %vm483_vm2, %v468_v40, %v426_v41 }
 0x108   : > { %v868_v43 = vcombine.low %v485_v42, %v487_v39 }
 0x109   : > { %v436_v45 = vpop.permute.xlu1 %435 }
 0x10a   : > { %v495_v47 = vsel %vm483_vm2, %v478_v44, %v436_v45  ;;  %933 = vmatprep.mubr.msk.bf16.mxu0 %vm559_vm3, %v868_v43  ;;  %v434_v48 = vpop.permute.xlu0 %433 }
 0x10b   : > { %v493_v49 = vsel %vm483_vm2, %v476_v46, %v434_v48 }
 0x10c   : > { %v870_v13 = vcombine.low %v493_v49, %v495_v47 }
 0x10d   : > { %v432_v52 = vpop.permute.xlu1 %431 }
 0x10e   : > { %v491_v54 = vsel %vm483_vm2, %v474_v6, %v432_v52  ;;  %937 = vmatprep.mubr.msk.bf16.mxu1 %vm559_vm3, %v870_v13  ;;  %v430_v55 = vpop.permute.xlu0 %429 }
 0x10f   : > { %v489_v56 = vsel %vm483_vm2, %v472_v53, %v430_v55 }
 0x110   : > { %v869_v16 = vcombine.low %v489_v56, %v491_v54 }
 0x111   : > { %v440_v59 = vpop.permute.xlu1 %439 }
 0x112   : > { %v499_v61 = vsel %vm483_vm2, %v482_v0, %v440_v59  ;;  %934 = vmatmul.mubr.msk.bf16.vlgmr.msra.gmra.mrb[0].mxu0 %vm559_vm3, %v869_v16  ;;  %v438_v62 = vpop.permute.xlu0 %437 }
 0x113   : > { %v497_v63 = vsel %vm483_vm2, %v480_v60, %v438_v62 }
 0x114   : > { %v871_v1 = vcombine.low %v497_v63, %v499_v61 }
 0x116   : > { %938 = vmatmul.mubr.msk.bf16.vlgmr.msra.gmra.mrb[0].mxu1 %vm559_vm3, %v871_v1 }
 0x1e5   : > { %v935_v3 = vpop.f32.mrb[0].mxu0 }
 0x1e6   : > { %v615_v4 = vadd.f32 %v935_v3, %v867_v25  ;;  %v606_v5 = vpop.f32.mrb[1].mxu0 }
 0x1e7   : > { %v607_v35 = vadd.f32 %v867_v25, %v606_v5  ;;  %v936_v7 = vpop.f32.mrb[2].mxu0 }
 0x1e8   : > { %v882_v8 = vmul.f32 -1.442695, %v615_v4  ;;  %v618_v9 = vadd.f32 %v936_v7, %v867_v25  ;;  %v609_v10 = vpop.f32.mrb[3].mxu0 }
 0x1e9   : > { %v880_v12 = vmul.f32 -1.442695, %v607_v35  ;;  %v610_v14 = vadd.f32 %v867_v25, %v609_v10  ;;  %v939_v15 = vpop.f32.mrb[0].mxu1 }
 0x1ea   : > { %1063 = vpow2.f32 %v882_v8  ;;  %v883_v17 = vmul.f32 -1.442695, %v618_v9  ;;  %v631_v18 = vadd.f32 %v939_v15, %v867_v25  ;;  %v622_v19 = vpop.f32.mrb[1].mxu1 }
 0x1eb   : > { %1065 = vpow2.f32 %v880_v12  ;;  %v881_v20 = vmul.f32 -1.442695, %v610_v14  ;;  %v623_v21 = vadd.f32 %v867_v25, %v622_v19  ;;  %v940_v22 = vpop.f32.mrb[2].mxu1 }
 0x1ec   : > { %1067 = vpow2.f32 %v883_v17  ;;  %v886_v23 = vmul.f32 -1.442695, %v631_v18  ;;  %v634_v24 = vadd.f32 %v940_v22, %v867_v25  ;;  %v625_v26 = vpop.f32.mrb[3].mxu1 }
 0x1ed   : > { %1069 = vpow2.f32 %v881_v20  ;;  %v884_v27 = vmul.f32 -1.442695, %v623_v21  ;;  %v626_v28 = vadd.f32 %v867_v25, %v625_v26 }
 0x1ee   : > { %1071 = vpow2.f32 %v886_v23  ;;  %v887_v29 = vmul.f32 -1.442695, %v634_v24 }
 0x1ef   : > { %1073 = vpow2.f32 %v884_v27  ;;  %v885_v30 = vmul.f32 -1.442695, %v626_v28 }
 0x1f0   : > { %1075 = vpow2.f32 %v887_v29 }
 0x1f1   : > { %1077 = vpow2.f32 %v885_v30 }
 0x1f4   : > { %v1064_v31 = vpop.eup %1063 }
 0x1f5   : > { %v1066_v32 = vpop.eup %1065  ;;  %v663_v33 = vadd.f32 1.0, %v1064_v31 }
 0x1f6   : > { %v1068_v34 = vpop.eup %1067  ;;  %v661_v36 = vadd.f32 1.0, %v1066_v32 }
 0x1f7   : > { %v1070_v37 = vpop.eup %1069  ;;  %1079 = vrcp.f32 %v663_v33  ;;  %v664_v38 = vadd.f32 1.0, %v1068_v34 }
 0x1f8   : > { %v1072_v39 = vpop.eup %1071  ;;  %1081 = vrcp.f32 %v661_v36  ;;  %v662_v40 = vadd.f32 1.0, %v1070_v37 }
 0x1f9   : > { %v1074_v41 = vpop.eup %1073  ;;  %1083 = vrcp.f32 %v664_v38  ;;  %v667_v42 = vadd.f32 1.0, %v1072_v39 }
 0x1fa   : > { %v1076_v2 = vpop.eup %1075  ;;  %1085 = vrcp.f32 %v662_v40  ;;  %v665_v43 = vadd.f32 1.0, %v1074_v41 }
 0x1fb   : > { %v1078_v11 = vpop.eup %1077  ;;  %1087 = vrcp.f32 %v667_v42  ;;  %v668_v44 = vadd.f32 1.0, %v1076_v2 }
 0x1fc   : > { %1089 = vrcp.f32 %v665_v43  ;;  %v666_v45 = vadd.f32 1.0, %v1078_v11 }
 0x1fd   : > { %1091 = vrcp.f32 %v668_v44 }
 0x1fe   : > { %1093 = vrcp.f32 %v666_v45 }
 0x201   : > { %v1080_v46 = vpop.eup %1079 }
 0x202   : > { %v1082_v47 = vpop.eup %1081  ;;  %v687_v50 = vmul.f32 %v1080_v46, %v615_v4 }
 0x203   : > { %v1084_v48 = vpop.eup %1083  ;;  %v685_v6 = vmul.f32 %v1082_v47, %v607_v35 }
 0x204   : > { %v1086_v49 = vpop.eup %1085  ;;  %v688_v13 = vmul.f32 %v1084_v48, %v618_v9 }
 0x205   : > { %v1088_v51 = vpop.eup %1087  ;;  %v686_v52 = vmul.f32 %v1086_v49, %v610_v14 }
 0x206   : > { %v1090_v53 = vpop.eup %1089  ;;  %v902_v54 = vpack.c.bf16 %v688_v13, %v687_v50  ;;  %v691_v16 = vmul.f32 %v1088_v51, %v631_v18 }
 0x207   : > { %v1092_v55 = vpop.eup %1091  ;;  %v897_v56 = vpack.c.bf16 %v686_v52, %v685_v6  ;;  %v689_v0 = vmul.f32 %v1090_v53, %v623_v21 }
 0x208   : > { %v1094_v57 = vpop.eup %1093  ;;  %914 = vst [vmem:[%s252_s18 + $0x8] sm:$0xff] %v902_v54   ;;  %v692_v58 = vmul.f32 %v1092_v55, %v634_v24 }
 0x209   : > { %898 = vst [vmem:[%s252_s18] sm:$0xff] %v897_v56   ;;  %v690_v59 = vmul.f32 %v1094_v57, %v626_v28 }
 0x20a   : > { %v912_v60 = vpack.c.bf16 %v692_v58, %v691_v16 }
 0x20b   : > { %v907_v61 = vpack.c.bf16 %v690_v59, %v689_v0 }
 0x20c   : > { %916 = vst [vmem:[%s252_s18 + $0x18] sm:$0xff] %v912_v60  }
 0x20d   : > { %915 = vst [vmem:[%s252_s18 + $0x10] sm:$0xff] %v907_v61  }
 0x20e   : > { %1194 = shalt.err (!%p1191_p2)
}
 0x20f   : > { %s1195_s8 = scalar_lea.hbm %s1618_s4, 512  ;;  %s1199_s22 = scalar_lea.hbm %s1670_s3, 1024 }
 0x210   : > { %p1196_p0 = scmp.ne.s32.totalorder %s1618_s4, %s1195_s8  ;;  %p1200_p6 = scmp.lt.u32.totalorder %s1618_s4, %s1670_s3 }
 0x211   : > { %p1201_p7 = scmp.lt.u32.totalorder %s1199_s22, %s1195_s8  ;;  %p1203_p8 = scmp.lt.u32.totalorder %s1195_s8, %s1618_s4 }
 0x212   : > { %p1197_p4 = pnand %p1196_p0, %p1685_p12 }
 0x213   : > { %p1202_p11 = por %p1201_p7, %p1200_p6 }
 0x214   : > { %p1198_p13 = pneg %p1197_p4 }
 0x215   : > { %p1204_p1 = por %p1203_p8, %p1202_p11 }
 0x217   : > { %p1205_p10 = pnand %p1204_p1, %p1198_p13 }
 0x219   : > { %1208 = shalt.err (!%p1205_p10)
}
 0x21a   : > { %s1278_s18 = smov 64   ;;  %s1279_s26 = smov 4  }
 0x21b   : > { %962 = dma.vmem_to_hbm [thread:$0]  (%p1685_p12), %s1613_s5, 512, %s1618_s4, %s710_s15, %s1278_s18, %s1278_s18, %s1279_s26  }
 0x21c PF: > { %s741_s10 = sand.u32 1, %s1247_s12   ;;  %p1686_p3 = scmp.ne.s32.totalorder %s1678_s23, 0 }
 0x21d   : > { %p1687_p5 = scmp.ge.s32.totalorder %s1267_s17, 2  ;;  %s742_s19 = scalar_lea.sflag [#allocation4], %s741_s10 }
 0x21f   : > { %p976_p9 = pnand %p1687_p5, %p1686_p3 }
 0x221   : > { %1242 = dma.done.wait (!%p976_p9), %s742_s19, 512  }
 0x222   : > { %1244 = vsyncadd (!%p976_p9), %s742_s19, 4294966784  ;;  %s20_s17 = sadd.s32 1, %s1267_s17   ;;  %s1688_s12 = smov %s1251_s13 }
 0x223   : > { %p17_p2 = scmp.ge.s32.totalorder %s20_s17, 4   ;;  %s1689_s13 = smov %s1255_s14 }
 0x224   : > { %s1690_s14 = smov %s1449_s6  ;;  %s1691_s15 = smov %s1263_s16 }
 0x225   : > { %s1692_s16 = smov %s1694_s25  ;;  %19 = sbr.rel (!%p17_p2) target bundleno = 7 (0x7), region = 88 }
 0x22c   :  { %747 = vsyncpa [#allocation3], 1 }
 0x22d   :  { %749 = vsyncpa [#allocation3 + $0x1], 1 }
 0x22e   :  { %750 = vsyncpa [#allocation6], 1 }
 0x22f   :  { %751 = vsyncpa [#allocation4], 1 }
 0x230   :  { %753 = vsyncpa [#allocation4 + $0x1], 1 }

</bundles_post_ra>
